<compile_context>
chip_gen: v7x
topology: tpu7x:2x2x1
jax: 0.10.0
libtpu: 0.0.40
codegen_flags: <defaults>
</compile_context>

<pallas_src>
import math

import jax
import jax.numpy as jnp
from jax.experimental import pallas as pl
from jax.experimental.pallas import tpu as pltpu

MAX_SNAPS_PER_BRICK = 8  # synthetic small constant for this test


# --------------------------------------------------------------------------
# Kernel: one MXU matmul + one vector bias add per batch tile, writing the
# FINAL (lane-padded) output layout: noop logit in column 0, flattened joint
# logits in columns 1:1+C1*C2, zeros in the padding lanes.
# --------------------------------------------------------------------------
def _fused_head_kernel(x_ref, w_ref, b_ref, out_ref):
    # x:   (tb, C)
    # w:   (C, Np)      Np = 128-aligned padded output width
    # b:   (1, Np)
    # out: (tb, Np)
    out_ref[...] = (
        jnp.dot(x_ref[...], w_ref[...], preferred_element_type=jnp.float32)
        + b_ref[...]
    )


# --------------------------------------------------------------------------
# Param-prep (batch-independent, done once): fold coarse/fine/emb/noop weights
# into a single weight / bias and pad the output width to a multiple of 128
# so the kernel's stores are unmasked full-lane vst's.
# --------------------------------------------------------------------------
def prepare_fused_params(params):
    wc = params["w_coarse"]          # (C, C1)
    wf = params["w_fine"]            # (C, C2)
    C, C1 = wc.shape
    C2 = wf.shape[1]

    # W_joint[c, i*C2 + f] = wc[c, i] + wf[c, f]
    w_joint = (wc[:, :, None] + wf[:, None, :]).reshape(C, C1 * C2)

    # b_joint[i*C2 + f] = bc[i] + (emb @ wf)[i, f] + bf[f]
    b_joint = (
        params["b_coarse"].reshape(C1, 1)
        + params["emb"] @ wf
        + params["b_fine"].reshape(1, C2)
    ).reshape(1, C1 * C2)

    w_fused = jnp.concatenate([params["w_noop"], w_joint], axis=1)   # (C, N)
    b_fused = jnp.concatenate([params["b_noop"], b_joint], axis=1)   # (1, N)

    n_out = w_fused.shape[1]                                         # 1 + C1*C2
    n_pad = ((n_out + 127) // 128) * 128                             # lane-dense
    if n_pad != n_out:
        w_fused = jnp.pad(w_fused, ((0, 0), (0, n_pad - n_out)))
        b_fused = jnp.pad(b_fused, ((0, 0), (0, n_pad - n_out)))
    return w_fused, b_fused, n_out


# --------------------------------------------------------------------------
# Wrapper: pad batch to a sublane-aligned tile, run the (batch-tiled) kernel,
# slice the real rows / columns back out.
# --------------------------------------------------------------------------
def coarse_to_fine_symbolic_cursor_decoder(x, w_fused, b_fused, n_out):
    B, C = x.shape
    Np = w_fused.shape[1]                     # 128-aligned padded output width

    # batch tile: sublane-aligned, capped at 128 rows per grid step
    tb = 128 if B >= 128 else max(8, ((B + 7) // 8) * 8)
    Bp = ((B + tb - 1) // tb) * tb
    if Bp != B:
        x = jnp.pad(x, ((0, Bp - B), (0, 0)))

    grid = (Bp // tb,)

    flops = 2 * Bp * C * Np + Bp * Np
    bytes_accessed = 4 * (Bp * C + C * Np + Np + Bp * Np)

    out = pl.pallas_call(
        _fused_head_kernel,
        grid=grid,
        out_shape=jax.ShapeDtypeStruct((Bp, Np), jnp.float32),
        in_specs=[
            pl.BlockSpec((tb, C), lambda i: (i, 0)),
            pl.BlockSpec((C, Np), lambda i: (0, 0)),
            pl.BlockSpec((1, Np), lambda i: (0, 0)),
        ],
        out_specs=pl.BlockSpec((tb, Np), lambda i: (i, 0)),
        cost_estimate=pl.CostEstimate(
            flops=flops, transcendentals=0, bytes_accessed=bytes_accessed
        ),
        compiler_params=pltpu.CompilerParams(
            dimension_semantics=("parallel",)
        ),
    )(x, w_fused, b_fused)

    return out[:B, :n_out]                    # drop padded rows / lanes


# --------------------------------------------------------------------------
# Pure-JAX reference of the original (literal) forward pass.
# --------------------------------------------------------------------------
def _reference(x, p):
    noop = x @ p["w_noop"] + p["b_noop"]
    coarse = x @ p["w_coarse"] + p["b_coarse"]
    cond = x[:, None, :] + p["emb"][None, :, :]                   # (B, C1, C)
    fine = jnp.einsum("bic,cf->bif", cond, p["w_fine"]) + p["b_fine"][None]
    joint = coarse[:, :, None] + fine
    return jnp.concatenate([noop, joint.reshape(x.shape[0], -1)], axis=-1)


def _init_params(key, channels, total_instances, max_snaps):
    """Deterministic PyTorch-style init (uniform +-1/sqrt(fan_in), N(0,1) emb)."""
    ks = jax.random.split(key, 7)

    def linear(kw, kb, fan_in, fan_out):
        bound = 1.0 / math.sqrt(fan_in)
        w = jax.random.uniform(kw, (fan_in, fan_out), jnp.float32, -bound, bound)
        b = jax.random.uniform(kb, (1, fan_out), jnp.float32, -bound, bound)
        return w, b

    w_noop, b_noop = linear(ks[0], ks[1], channels, 1)
    w_coarse, b_coarse = linear(ks[2], ks[3], channels, total_instances)
    w_fine, b_fine = linear(ks[4], ks[5], channels, max_snaps)
    emb = jax.random.normal(ks[6], (total_instances, channels), jnp.float32)
    return dict(
        w_noop=w_noop, b_noop=b_noop,
        w_coarse=w_coarse, b_coarse=b_coarse,
        w_fine=w_fine, b_fine=b_fine,
        emb=emb,
    )


if __name__ == "__main__":
    # small synthetic config consistent with the module's __init__
    max_instances = {"brick_a": 7, "brick_b": 7}
    total_instances = sum(m + 1 for m in max_instances.values())   # 16
    channels = 32
    batch = 2

    key = jax.random.PRNGKey(0)
    kx, kp = jax.random.split(key)
    x = jax.random.normal(kx, (batch, channels), jnp.float32)
    params = _init_params(kp, channels, total_instances, MAX_SNAPS_PER_BRICK)

    # batch-independent fusion + lane padding: done once at param-prep time
    w_fused, b_fused, n_out = prepare_fused_params(params)
    w_fused = jax.block_until_ready(w_fused)
    b_fused = jax.block_until_ready(b_fused)

    out = coarse_to_fine_symbolic_cursor_decoder(x, w_fused, b_fused, n_out)
    out = jax.block_until_ready(out)

    expected_shape = (batch, 1 + total_instances * MAX_SNAPS_PER_BRICK)
    assert out.shape == expected_shape, (out.shape, expected_shape)

    ref = jax.block_until_ready(_reference(x, params))
    assert jnp.allclose(out, ref, atol=1e-4, rtol=1e-4), "kernel != reference"

    print("KERNEL_OK")
</pallas_src>

<mosaic_0001>
module attributes {stable_mosaic.version = 11 : i64} {
  func.func @_fused_head_kernel(%arg0: i32, %arg1: memref<8x32xf32, #tpu.memory_space<vmem>>, %arg2: memref<32x256xf32, #tpu.memory_space<vmem>>, %arg3: memref<1x256xf32, #tpu.memory_space<vmem>>, %arg4: memref<8x256xf32, #tpu.memory_space<vmem>>) attributes {dimension_semantics = [#tpu.dimension_semantics<parallel>], iteration_bounds = array<i64: 1>, scalar_prefetch = 0 : i64, scratch_operands = 0 : i64, tpu.core_type = #tpu.core_type<tc>, window_params = [{transform_indices = @transform_0, window_bounds = array<i64: 8, 32>}, {pipeline_mode = #tpu.pipeline_mode<synchronous>, transform_indices = @transform_1, window_bounds = array<i64: 32, 256>}, {pipeline_mode = #tpu.pipeline_mode<synchronous>, transform_indices = @transform_2, window_bounds = array<i64: 1, 256>}, {transform_indices = @transform_3, window_bounds = array<i64: 8, 256>}]} {
    %c0 = arith.constant 0 : index
    %c0_0 = arith.constant 0 : index
    %0 = vector.load %arg1[%c0, %c0_0] : memref<8x32xf32, #tpu.memory_space<vmem>>, vector<8x32xf32>
    %c0_1 = arith.constant 0 : index
    %c0_2 = arith.constant 0 : index
    %1 = vector.load %arg2[%c0_1, %c0_2] : memref<32x256xf32, #tpu.memory_space<vmem>>, vector<32x256xf32>
    %cst = arith.constant dense<0.000000e+00> : vector<8x256xf32>
    %2 = tpu.matmul %0, %1, %cst {dimension_numbers = #tpu.dot_dimension_numbers<[1], [0], [0], [1], [0, 0, 1, 1], [], []>} : vector<8x32xf32>, vector<32x256xf32>, vector<8x256xf32> -> vector<8x256xf32>
    %c0_3 = arith.constant 0 : index
    %c0_4 = arith.constant 0 : index
    %3 = vector.load %arg3[%c0_3, %c0_4] : memref<1x256xf32, #tpu.memory_space<vmem>>, vector<1x256xf32>
    %4 = vector.broadcast %3 : vector<1x256xf32> to vector<8x256xf32>
    %5 = arith.addf %2, %4 : vector<8x256xf32>
    %c0_5 = arith.constant 0 : index
    %c0_6 = arith.constant 0 : index
    %6 = vector.load %arg4[%c0_5, %c0_6] : memref<8x256xf32, #tpu.memory_space<vmem>>, vector<8x256xf32>
    tpu.vector_store %arg4[%c0_5, %c0_6], %5 {strides = array<i32>} : memref<8x256xf32, #tpu.memory_space<vmem>>, vector<8x256xf32>,
    return
  }
  func.func @transform_0(%arg0: i32) -> (i32, i32) {
    %c0_i32 = arith.constant 0 : i32
    %c0_i32_0 = arith.constant 0 : i32
    return %arg0, %c0_i32 : i32, i32
  }
  func.func @transform_1(%arg0: i32) -> (i32, i32) {
    %c0_i32 = arith.constant 0 : i32
    %c0_i32_0 = arith.constant 0 : i32
    %c0_i32_1 = arith.constant 0 : i32
    return %c0_i32, %c0_i32_0 : i32, i32
  }
  func.func @transform_2(%arg0: i32) -> (i32, i32) {
    %c0_i32 = arith.constant 0 : i32
    %c0_i32_0 = arith.constant 0 : i32
    %c0_i32_1 = arith.constant 0 : i32
    return %c0_i32, %c0_i32_0 : i32, i32
  }
  func.func @transform_3(%arg0: i32) -> (i32, i32) {
    %c0_i32 = arith.constant 0 : i32
    %c0_i32_0 = arith.constant 0 : i32
    return %arg0, %c0_i32 : i32, i32
  }
}

</mosaic_0001>

<bundles_post_ra>
// kernel: tpu_custom_call.1
= control target key start
LH: loop header
LB: loop body
LE: loop exit
PB: predicated region body
PF: predicated region fallthrough
CT: control target
= control target key end

     0   :  { %8 = vsyncpa [#allocation3], 0  ;;  %s314_s0 = inlined_call_operand.hbm [shape: f32[8,32], index: 0, kind: input, shape index: {}]   ;;  %s315_s1 = inlined_call_operand.hbm [shape: f32[32,256], index: 1, kind: input, shape index: {}]   ;;  %s316_s2 = inlined_call_operand.vmem [shape: f32[1,256], index: 2, kind: input, shape index: {}]   ;;  %s317_s3 = inlined_call_operand.hbm [shape: f32[8,256], index: 3, kind: output, shape index: {}]  }
   0x1   :  { %9 = vsyncpa [#allocation6], 0 }
   0x2   :  { %10 = vsyncpa [#allocation4], 0  ;;  %s242_s12 = smov [#allocation2]   ;;  %s243_s14 = smov [#allocation5]  }
   0x3   :  { %s17_s13 = sshll.u32 %s242_s12, 4  ;;  %s26_s15 = sshll.u32 %s243_s14, 4  ;;  %s18_s13 = int_to_ptr.vmem [resolvable:$true] %s17_s13  ;;  %s268_s15 = int_to_ptr.vmem [resolvable:$true] %s26_s15 }
   0x4   :  { %s170_s18 = scalar_lea.hbm %s314_s0, 128 }
   0x5   :  { %p171_p0 = scmp.ne.s32.totalorder %s314_s0, %s170_s18  ;;  %p174_p1 = scmp.lt.u32.totalorder %s170_s18, %s314_s0 }
   0x7   :  { %p176_p2 = pnand %p174_p1, %p171_p0 }
   0x9   :  { %179 = shalt.err (!%p176_p2)
}
   0xa   :  { %s180_s23 = scalar_lea.vmem %s18_s13, 128  ;;  %p185_p4 = scmp.lt.s32.totalorder %s18_s13, %s18_s13 }
   0xb   :  { %p181_p3 = scmp.ne.s32.totalorder %s18_s13, %s180_s23  ;;  %p186_p5 = scmp.lt.s32.totalorder %s180_s23, %s180_s23 }
   0xd   :  { %p187_p6 = por %p186_p5, %p185_p4 }
   0xf   :  { %p188_p7 = pnand %p187_p6, %p181_p3 }
  0x11   :  { %191 = shalt.err (!%p188_p7)
}
  0x12   :  { %20 = dma.hbm_to_vmem [thread:$0]  %s314_s0, 128, %s18_s13, [#allocation3]  }
  0x13   :  { %s192_s28 = scalar_lea.hbm %s315_s1, 1024 }
  0x14   :  { %p193_p8 = scmp.ne.s32.totalorder %s315_s1, %s192_s28  ;;  %p196_p9 = scmp.lt.u32.totalorder %s192_s28, %s315_s1 }
  0x16   :  { %p198_p10 = pnand %p196_p9, %p193_p8 }
  0x18   :  { %201 = shalt.err (!%p198_p10)
}
  0x19   :  { %s202_s6 = scalar_lea.vmem %s268_s15, 1024  ;;  %p207_p12 = scmp.lt.s32.totalorder %s268_s15, %s268_s15 }
  0x1a   :  { %p203_p11 = scmp.ne.s32.totalorder %s268_s15, %s202_s6  ;;  %p208_p13 = scmp.lt.s32.totalorder %s202_s6, %s202_s6 }
  0x1c   :  { %p209_p0 = por %p208_p13, %p207_p12 }
  0x1e   :  { %p210_p1 = pnand %p209_p0, %p203_p11 }
  0x20   :  { %213 = shalt.err (!%p210_p1)
}
  0x21   :  { %s244_s0 = smov 256   ;;  %s245_s7 = smov 16  }
  0x22   :  { %32 = dma.hbm_to_vmem [thread:$0]  %s315_s1, 1024, %s268_s15, [#allocation6], %s244_s0, %s244_s0, %s245_s7  }
  0x23   :  { %236 = dma.done.wait [#allocation3], 128  }
  0x24   :  { %237 = vsyncadd [#allocation3], 4294967168 }
  0x25   :  { %238 = dma.done.wait [#allocation6], 1024  }
  0x26   :  { %239 = vsyncadd [#allocation6], 4294966272  ;;  %v246_v0 = vmov 0.0   ;;  %v43_v1 = vld [vmem:[#allocation5 + $0x8] sm:$0xff]  ;;  %v45_v2 = vld [vmem:[#allocation5 + $0x18] sm:$0xff]  ;;  %vm62_vm0 = vcmask 261120   ;;  %v52_v14 = vlaneseq }
  0x27   :  { %130 = vmatprep.mubr.f32.mxu0 %v246_v0  ;;  %v42_v3 = vld [vmem:[#allocation5] sm:$0xff]  ;;  %v156_v4 = vpack.c.bf16 %v45_v2, %v43_v1  ;;  %v44_v5 = vld [vmem:[#allocation5 + $0x10] sm:$0xff]  ;;  %v47_v6 = vld [vmem:[#allocation5 + $0x28] sm:$0xff]  ;;  %s247_s11 = smov [#allocation7]  }
  0x28   :  { %v49_v7 = vld [vmem:[#allocation5 + $0x38] sm:$0xff]  ;;  %v158_v8 = vpack.c.bf16 %v44_v5, %v42_v3  ;;  %v46_v10 = vld [vmem:[#allocation5 + $0x20] sm:$0xff]  ;;  %v48_v11 = vld [vmem:[#allocation5 + $0x30] sm:$0xff]  ;;  %v53_v15 = vshrl.u32 %v52_v14, 7  ;;  %s145_s12 = sshll.u32 %s247_s11, 4  ;;  %s146_s12 = int_to_ptr.vmem [resolvable:$true] %s145_s12 }
  0x29   :  { %v160_v9 = vpack.c.bf16 %v49_v7, %v47_v6  ;;  %157 = vmatprep.subr.bf16.mxu0 %v156_v4  ;;  %v162_v12 = vpack.c.bf16 %v48_v11, %v46_v10  ;;  %v41_v13 = vld [vmem:[#allocation2] sm:$0xff]  ;;  %s214_s13 = scalar_lea.vmem %s146_s12, 256  ;;  %p219_p3 = scmp.lt.s32.totalorder %s146_s12, %s146_s12 }
  0x2a   :  { %159 = vmatpush1.bf16.msra.mxu0 %v158_v8  ;;  %v54_v16 = vsub.s32 0, %v53_v15  ;;  %v50_v17 = vld [vmem:[%s316_s2] sm:$0x3]  ;;  %v58_v18 = vsub.s32 1, %v53_v15  ;;  %p215_p2 = scmp.ne.s32.totalorder %s146_s12, %s214_s13  ;;  %p220_p4 = scmp.lt.s32.totalorder %s214_s13, %s214_s13 }
  0x2b   :  { %161 = vmatprep.subr.bf16.mxu0 %v160_v9 }
  0x2c   :  { %v55_v19 = vrot.slane %v50_v17, %v54_v16  ;;  %v59_v20 = vrot.slane %v50_v17, %v58_v18  ;;  %p221_p5 = por %p220_p4, %p219_p3 }
  0x2e   :  { %163 = vmatpush1.bf16.msra.mxu0 %v162_v12  ;;  %p222_p6 = pnand %p221_p5, %p215_p2 }
  0x31   :  { %155 = vmatmul.mubr.msk.f32.vlgmr.msra.gmra.mrb[0].mxu0 %vm62_vm0, %v41_v13 }
 0x104   :  { %v132_v21 = vpop.f32.mrb[0].mxu0 }
 0x105   :  { %v133_v22 = vadd.f32 %v132_v21, %v55_v19  ;;  %v134_v23 = vpop.f32.mrb[1].mxu0 }
 0x106   :  { %v135_v24 = vadd.f32 %v134_v23, %v59_v20 }
 0x107   :  { %137 = vst [vmem:[#allocation7] sm:$0xff] %v133_v22 }
 0x108   :  { %138 = vst [vmem:[#allocation7 + $0x8] sm:$0xff] %v135_v24 }
 0x109   :  { %225 = shalt.err (!%p222_p6)
}
 0x10a   :  { %s226_s15 = scalar_lea.hbm %s317_s3, 256 }
 0x10b   :  { %p227_p7 = scmp.ne.s32.totalorder %s317_s3, %s226_s15  ;;  %p230_p8 = scmp.lt.u32.totalorder %s226_s15, %s317_s3 }
 0x10d   :  { %p232_p9 = pnand %p230_p8, %p227_p7 }
 0x10f   :  { %235 = shalt.err (!%p232_p9)
}
 0x110   :  { %148 = dma.vmem_to_hbm [thread:$0]  %s146_s12, 256, %s317_s3, [#allocation4]  }
 0x111   :  { %240 = dma.done.wait [#allocation4], 256  }
 0x112   :  { %241 = vsyncadd [#allocation4], 4294967040 }
 0x113   :  { %152 = vsyncpa [#allocation3], 1 }
 0x114   :  { %153 = vsyncpa [#allocation6], 1 }
 0x115   :  { %154 = vsyncpa [#allocation4], 1 }

</bundles_post_ra>
